<compile_context>
chip_gen: v7x
topology: tpu7x:2x2x1
jax: 0.10.0
libtpu: 0.0.40
codegen_flags: <defaults>
</compile_context>

<pallas_src>
import jax
import jax.numpy as jnp
from jax.experimental import pallas as pl
from jax.experimental.pallas import tpu as pltpu

LANE = 128
DROPOUT_P = 0.2
BN_EPS = 1e-5
# Row / K tile for the adjacency matmul.  512 is safe for v7x's 64 MiB VMEM;
# v5e/v6e (128 MiB) can be swept up to 1024-2048.
_TILE = 512

_SMEM = pl.BlockSpec(memory_space=pltpu.MemorySpace.SMEM)
_VMEM = pl.BlockSpec(memory_space=pltpu.MemorySpace.VMEM)


def _round_up(n, m):
    return ((n + m - 1) // m) * m


def _pad_to(a, shape):
    return jnp.pad(a, [(0, t - s) for s, t in zip(a.shape, shape)])


def _choose_tiles(n):
    n8 = _round_up(n, 8)
    if n8 <= _TILE:
        return n8, n8, n8                      # tm, tk, n_pad  (single tile)
    n_pad = _round_up(n, _TILE)
    return _TILE, _TILE, n_pad


# ------------------------- tiled GCN layer (both encoders) --------------------
def _gcn_layer_kernel(adj_ref, h_ref, w_ref, b_ref, a_ref, out_ref, acc_ref):
    # out = PReLU(A_hat @ H @ W + b), accumulated as (A_hat @ H) over K tiles.
    k = pl.program_id(1)

    @pl.when(k == 0)
    def _():
        acc_ref[...] = jnp.zeros_like(acc_ref)

    acc_ref[...] += jnp.dot(adj_ref[...], h_ref[...],
                            preferred_element_type=jnp.float32)

    @pl.when(k == pl.num_programs(1) - 1)
    def _():
        z = jnp.dot(acc_ref[...].astype(jnp.bfloat16), w_ref[...],
                    preferred_element_type=jnp.float32) + b_ref[...]
        z = jnp.where(z > 0, z, a_ref[...] * z)          # per-column PReLU
        out_ref[...] = z.astype(out_ref.dtype)


def _gcn_layer(adj, h, w, b, a, *, tm, tk, out_dtype):
    # TODO(synk): for realistic (sparse) graphs, replace the dense A_hat stream
    # with CSR row gathers via PrefetchScalarGridSpec / block-sparse pl.when.
    n_pad = adj.shape[0]
    cin = h.shape[1]
    cout = w.shape[1]
    grid = (n_pad // tm, n_pad // tk)
    out_bytes = n_pad * cout * jnp.dtype(out_dtype).itemsize
    cost = pl.CostEstimate(
        flops=2 * n_pad * n_pad * cin + 2 * n_pad * cin * cout,
        transcendentals=0,
        bytes_accessed=(n_pad * n_pad * 2 + n_pad * cin * 2
                        + cin * cout * 2 + 4 * cout * 4 + out_bytes),
    )
    const = dict(pipeline_mode=pl.Buffered(buffer_count=1))  # never re-indexed
    return pl.pallas_call(
        _gcn_layer_kernel,
        out_shape=jax.ShapeDtypeStruct((n_pad, cout), out_dtype),
        grid=grid,
        in_specs=[
            pl.BlockSpec((tm, tk), lambda m, k: (m, k)),           # A_hat tile
            pl.BlockSpec((tk, cin), lambda m, k: (k, 0)),          # H tile
            pl.BlockSpec((cin, cout), lambda m, k: (0, 0), **const),   # W
            pl.BlockSpec((1, cout), lambda m, k: (0, 0), **const),     # b row
            pl.BlockSpec((1, cout), lambda m, k: (0, 0), **const),     # alpha
        ],
        out_specs=pl.BlockSpec((tm, cout), lambda m, k: (m, 0)),
        scratch_shapes=[pltpu.VMEM((tm, cin), jnp.float32)],
        compiler_params=pltpu.CompilerParams(
            dimension_semantics=("parallel", "arbitrary"),
            vmem_limit_bytes=48 * 1024 * 1024),
        cost_estimate=cost,
    )(adj, h, w, b, a)


# ------------------------------- predictor ------------------------------------
def _predictor_kernel(nvalid_ref, alpha_ref, h_ref, w_ref, b_ref, gamma_ref,
                      beta_ref, u1_ref, u2_ref, o1_ref, o2_ref):
    # Linear -> BatchNorm1d (training-mode batch stats over the true-N rows,
    # biased var, eps=1e-5) -> PReLU -> Dropout(0.2), two independent views.
    n_valid = nvalid_ref[0]
    z = jnp.dot(h_ref[...].astype(jnp.bfloat16), w_ref[...],
                preferred_element_type=jnp.float32) + b_ref[...]

    rows = jax.lax.broadcasted_iota(jnp.int32, z.shape, 0)
    valid = (rows < n_valid).astype(jnp.float32)       # mask padded rows
    cnt = n_valid.astype(jnp.float32)
    mean = jnp.sum(z * valid, axis=0, keepdims=True) / cnt
    cen = (z - mean) * valid
    var = jnp.sum(cen * cen, axis=0, keepdims=True) / cnt
    zn = (z - mean) * jax.lax.rsqrt(var + BN_EPS)
    zn = zn * gamma_ref[...] + beta_ref[...]
    # TODO(synk): BatchNorm1d running statistics are not tracked (stateless).

    a = alpha_ref[0]
    zn = jnp.where(zn > 0, zn, a * zn)

    zs = zn * (1.0 / (1.0 - DROPOUT_P))                 # hoisted, shared by views
    o1_ref[...] = jnp.where(u1_ref[...] >= DROPOUT_P, zs, 0.0)
    o2_ref[...] = jnp.where(u2_ref[...] >= DROPOUT_P, zs, 0.0)


def _predictor_pair(h_pair, pred, u1, u2, n_valid):
    # h_pair is the (n_pad, 2*H_pad) lane-concat encoder output; the BlockSpec
    # below selects only the online 128-lane half (no glue-side slice copy).
    # TODO(synk): for very large N, row-tile with a two-pass (sum/sumsq then
    # normalize) BatchNorm reduction instead of one resident block.
    n_pad = h_pair.shape[0]
    hid = pred["w"].shape[1]
    return pl.pallas_call(
        _predictor_kernel,
        out_shape=(jax.ShapeDtypeStruct((n_pad, hid), jnp.float32),
                   jax.ShapeDtypeStruct((n_pad, hid), jnp.float32)),
        in_specs=[
            _SMEM,                                        # n_valid (1,) int32
            _SMEM,                                        # PReLU alpha (1,)
            pl.BlockSpec((n_pad, hid), lambda: (0, 0)),   # online half of h
            _VMEM, _VMEM, _VMEM, _VMEM,                   # w, b, gamma, beta
            _VMEM, _VMEM,                                 # dropout uniforms
        ],
        out_specs=(_VMEM, _VMEM),
        compiler_params=pltpu.CompilerParams(vmem_limit_bytes=48 * 1024 * 1024),
    )(jnp.array([n_valid], jnp.int32), pred["alpha"], h_pair,
      pred["w"], pred["b"], pred["gamma"], pred["beta"], u1, u2)


# ------------------------------- plain-JAX glue --------------------------------
def normalized_adjacency(edge_index, num_nodes, edge_weight=None):
    # TODO(synk): keep A_hat sparse (CSR) for realistic graphs instead of dense.
    src, dst = edge_index[0], edge_index[1]
    if edge_weight is None:
        edge_weight = jnp.ones(src.shape[0], dtype=jnp.float32)
    adj = jnp.zeros((num_nodes, num_nodes), jnp.float32).at[dst, src].add(edge_weight)
    adj = adj + jnp.eye(num_nodes, dtype=jnp.float32)
    deg = adj.sum(axis=1)
    d_inv_sqrt = jax.lax.rsqrt(jnp.maximum(deg, 1e-12))
    return adj * d_inv_sqrt[:, None] * d_inv_sqrt[None, :]


def make_encoder_params(key, in_dim, hidden_dim):
    k1, k2 = jax.random.split(key)
    return dict(
        w1=jax.random.normal(k1, (in_dim, hidden_dim), jnp.float32) / jnp.sqrt(in_dim),
        b1=jnp.zeros((hidden_dim,), jnp.float32),
        w2=jax.random.normal(k2, (hidden_dim, hidden_dim), jnp.float32) / jnp.sqrt(hidden_dim),
        b2=jnp.zeros((hidden_dim,), jnp.float32),
        alpha1=jnp.asarray(0.25, jnp.float32),   # torch PReLU default
        alpha2=jnp.asarray(0.25, jnp.float32),
    )


def make_predictor_params(key, hidden_dim):
    return dict(
        w=jax.random.normal(key, (hidden_dim, hidden_dim), jnp.float32) / jnp.sqrt(hidden_dim),
        b=jnp.zeros((hidden_dim,), jnp.float32),
        gamma=jnp.ones((hidden_dim,), jnp.float32),    # BatchNorm1d weight
        beta=jnp.zeros((hidden_dim,), jnp.float32),    # BatchNorm1d bias
        alpha=jnp.asarray(0.25, jnp.float32),          # PReLU
    )


def _pack_encoder_pair(online, target, in_pad, hid_pad):
    # Lane-concat: online -> cols [0, hid_pad), target -> cols [hid_pad, 2*hid_pad).
    def cat_w1(name):
        return jnp.concatenate(
            [_pad_to(online[name], (in_pad, hid_pad)),
             _pad_to(target[name], (in_pad, hid_pad))], axis=1).astype(jnp.bfloat16)

    def blockdiag_w2(name):
        zo = jnp.zeros((hid_pad, hid_pad), jnp.float32)
        top = jnp.concatenate([_pad_to(online[name], (hid_pad, hid_pad)), zo], axis=1)
        bot = jnp.concatenate([zo, _pad_to(target[name], (hid_pad, hid_pad))], axis=1)
        return jnp.concatenate([top, bot], axis=0).astype(jnp.bfloat16)

    def cat_b(name):
        return jnp.concatenate(
            [_pad_to(online[name][None, :], (1, hid_pad)),
             _pad_to(target[name][None, :], (1, hid_pad))], axis=1)

    def cat_alpha(name):
        return jnp.concatenate(
            [jnp.full((1, hid_pad), online[name], jnp.float32),
             jnp.full((1, hid_pad), target[name], jnp.float32)], axis=1)

    return dict(w1=cat_w1("w1"), w2=blockdiag_w2("w2"),
                b1=cat_b("b1"), b2=cat_b("b2"),
                a1=cat_alpha("alpha1"), a2=cat_alpha("alpha2"))


def _pack_predictor(pred, hid_pad):
    return dict(
        w=_pad_to(pred["w"], (hid_pad, hid_pad)).astype(jnp.bfloat16),
        b=_pad_to(pred["b"][None, :], (1, hid_pad)),
        gamma=_pad_to(pred["gamma"][None, :], (1, hid_pad)),
        beta=_pad_to(pred["beta"][None, :], (1, hid_pad)),
        alpha=pred["alpha"].reshape((1,)),
    )


def update_target_encoder(params, momentum):
    # next_p = momentum * p_target + (1 - momentum) * p_online
    params["target"] = jax.tree_util.tree_map(
        lambda t, o: momentum * t + (1.0 - momentum) * o,
        params["target"], params["online"])
    return params


def bgrl_forward(params, x, edge_index, edge_weight=None, dropout_seed=0):
    n, in_dim = x.shape
    hidden = params["online"]["w2"].shape[1]
    in_pad = _round_up(in_dim, LANE)
    hid_pad = _round_up(hidden, LANE)
    tm, tk, n_pad = _choose_tiles(n)

    # augmentor = (identity, identity): aug1 == aug2 -> one adjacency, one
    # encoder-pair pass, one predictor pass.  bf16 A_hat / activations on the
    # MXU with f32 accumulation (small deviation vs f32 torch reference).
    adj = normalized_adjacency(edge_index, n, edge_weight)
    adj_p = _pad_to(adj, (n_pad, n_pad)).astype(jnp.bfloat16)
    x_p = _pad_to(x, (n_pad, in_pad)).astype(jnp.bfloat16)

    enc = _pack_encoder_pair(params["online"], params["target"], in_pad, hid_pad)

    # 2-layer GCN, both encoders lane-fused; layer-1 output kept bf16.
    h1 = _gcn_layer(adj_p, x_p, enc["w1"], enc["b1"], enc["a1"],
                    tm=tm, tk=tk, out_dtype=jnp.bfloat16)
    h2 = _gcn_layer(adj_p, h1, enc["w2"], enc["b2"], enc["a2"],
                    tm=tm, tk=tk, out_dtype=jnp.float32)     # (n_pad, 2*hid_pad)

    pred = _pack_predictor(params["predictor"], hid_pad)
    # TODO(synk): vary dropout_seed per training step to avoid repeated masks.
    u = jax.random.uniform(jax.random.PRNGKey(dropout_seed),
                           (2, n_pad, hid_pad), jnp.float32)
    o1, o2 = _predictor_pair(h2, pred, u[0], u[1], n)

    h_on = h2[:n, :hidden]
    h_tg = jax.lax.stop_gradient(h2[:n, hid_pad:hid_pad + hidden])  # no_grad
    h1_pred = o1[:n, :hidden]
    h2_pred = o2[:n, :hidden]
    # identity augmentations -> h1 == h2 and h1_target == h2_target exactly.
    return h_on, h_on, h1_pred, h2_pred, h_tg, h_tg


# ------------------------------------ main -------------------------------------
if __name__ == "__main__":
    key = jax.random.PRNGKey(0)
    k_x, k_e, k_enc, k_pred = jax.random.split(key, 4)

    num_nodes, in_dim, hidden_dim, num_edges = 16, 8, 32, 40

    x = jax.random.normal(k_x, (num_nodes, in_dim), jnp.float32)
    edge_index = jax.random.randint(k_e, (2, num_edges), 0, num_nodes, dtype=jnp.int32)

    online = make_encoder_params(k_enc, in_dim, hidden_dim)
    target = jax.tree_util.tree_map(lambda a: a + 0.0, online)   # deepcopy(online)
    predictor = make_predictor_params(k_pred, hidden_dim)
    params = dict(online=online, target=target, predictor=predictor)

    outs = bgrl_forward(params, x, edge_index)
    outs = jax.block_until_ready(outs)

    names = ("h1", "h2", "h1_pred", "h2_pred", "h1_target", "h2_target")
    for name, o in zip(names, outs):
        assert o.shape == (num_nodes, hidden_dim), (name, o.shape)
        assert o.dtype == jnp.float32, (name, o.dtype)
        assert bool(jnp.all(jnp.isfinite(o))), name

    # exercise the target-encoder EMA update once (momentum = 0.99)
    params = update_target_encoder(params, 0.99)
    jax.block_until_ready(params["target"]["w1"])

    print("KERNEL_OK")
</pallas_src>

<mosaic_0001>
module attributes {stable_mosaic.version = 11 : i64} {
  func.func @_gcn_layer_kernel(%arg0: i32, %arg1: i32, %arg2: memref<16x16xbf16, #tpu.memory_space<vmem>>, %arg3: memref<16x128xbf16, #tpu.memory_space<vmem>>, %arg4: memref<128x256xbf16, #tpu.memory_space<vmem>>, %arg5: memref<1x256xf32, #tpu.memory_space<vmem>>, %arg6: memref<1x256xf32, #tpu.memory_space<vmem>>, %arg7: memref<16x256xbf16, #tpu.memory_space<vmem>>, %arg8: memref<16x128xf32, #tpu.memory_space<vmem>>) attributes {dimension_semantics = [#tpu.dimension_semantics<parallel>, #tpu.dimension_semantics<arbitrary>], iteration_bounds = array<i64: 1, 1>, scalar_prefetch = 0 : i64, scratch_operands = 1 : i64, tpu.core_type = #tpu.core_type<tc>, window_params = [{transform_indices = @transform_0, window_bounds = array<i64: 16, 16>}, {transform_indices = @transform_1, window_bounds = array<i64: 16, 128>}, {pipeline_mode = #tpu.pipeline_mode<synchronous>, transform_indices = @transform_2, window_bounds = array<i64: 128, 256>}, {pipeline_mode = #tpu.pipeline_mode<synchronous>, transform_indices = @transform_3, window_bounds = array<i64: 1, 256>}, {pipeline_mode = #tpu.pipeline_mode<synchronous>, transform_indices = @transform_4, window_bounds = array<i64: 1, 256>}, {transform_indices = @transform_5, window_bounds = array<i64: 16, 256>}]} {
    %c0_i32 = arith.constant 0 : i32
    %0 = arith.cmpi eq, %arg1, %c0_i32 : i32
    %1 = arith.extui %0 : i1 to i32
    %c0_i32_0 = arith.constant 0 : i32
    %2 = arith.cmpi ne, %1, %c0_i32_0 : i32
    scf.if %2 {
      %cst_10 = arith.constant 0.000000e+00 : f32
      %12 = vector.broadcast %cst_10 : f32 to vector<16x128xf32>
      %c0_11 = arith.constant 0 : index
      %c0_12 = arith.constant 0 : index
      %13 = vector.load %arg8[%c0_11, %c0_12] : memref<16x128xf32, #tpu.memory_space<vmem>>, vector<16x128xf32>
      tpu.vector_store %arg8[%c0_11, %c0_12], %12 {strides = array<i32>} : memref<16x128xf32, #tpu.memory_space<vmem>>, vector<16x128xf32>,
    } else {
    }
    %c0 = arith.constant 0 : index
    %c0_1 = arith.constant 0 : index
    %3 = vector.load %arg8[%c0, %c0_1] : memref<16x128xf32, #tpu.memory_space<vmem>>, vector<16x128xf32>
    %c0_2 = arith.constant 0 : index
    %c0_3 = arith.constant 0 : index
    %4 = vector.load %arg2[%c0_2, %c0_3] : memref<16x16xbf16, #tpu.memory_space<vmem>>, vector<16x16xbf16>
    %c0_4 = arith.constant 0 : index
    %c0_5 = arith.constant 0 : index
    %5 = vector.load %arg3[%c0_4, %c0_5] : memref<16x128xbf16, #tpu.memory_space<vmem>>, vector<16x128xbf16>
    %cst = arith.constant dense<0.000000e+00> : vector<16x128xf32>
    %6 = tpu.matmul %4, %5, %cst {dimension_numbers = #tpu.dot_dimension_numbers<[1], [0], [0], [1], [0, 0, 1, 1], [], []>} : vector<16x16xbf16>, vector<16x128xbf16>, vector<16x128xf32> -> vector<16x128xf32>
    %7 = arith.addf %3, %6 : vector<16x128xf32>
    %c0_6 = arith.constant 0 : index
    %c0_7 = arith.constant 0 : index
    %8 = vector.load %arg8[%c0_6, %c0_7] : memref<16x128xf32, #tpu.memory_space<vmem>>, vector<16x128xf32>
    tpu.vector_store %arg8[%c0_6, %c0_7], %7 {strides = array<i32>} : memref<16x128xf32, #tpu.memory_space<vmem>>, vector<16x128xf32>,
    %c0_i32_8 = arith.constant 0 : i32
    %9 = arith.cmpi eq, %arg1, %c0_i32_8 : i32
    %10 = arith.extui %9 : i1 to i32
    %c0_i32_9 = arith.constant 0 : i32
    %11 = arith.cmpi ne, %10, %c0_i32_9 : i32
    scf.if %11 {
      %c0_10 = arith.constant 0 : index
      %c0_11 = arith.constant 0 : index
      %12 = vector.load %arg8[%c0_10, %c0_11] : memref<16x128xf32, #tpu.memory_space<vmem>>, vector<16x128xf32>
      %13 = arith.truncf %12 : vector<16x128xf32> to vector<16x128xbf16>
      %c0_12 = arith.constant 0 : index
      %c0_13 = arith.constant 0 : index
      %14 = vector.load %arg4[%c0_12, %c0_13] : memref<128x256xbf16, #tpu.memory_space<vmem>>, vector<128x256xbf16>
      %cst_14 = arith.constant dense<0.000000e+00> : vector<16x256xf32>
      %15 = tpu.matmul %13, %14, %cst_14 {dimension_numbers = #tpu.dot_dimension_numbers<[1], [0], [0], [1], [0, 0, 1, 1], [], []>} : vector<16x128xbf16>, vector<128x256xbf16>, vector<16x256xf32> -> vector<16x256xf32>
      %c0_15 = arith.constant 0 : index
      %c0_16 = arith.constant 0 : index
      %16 = vector.load %arg5[%c0_15, %c0_16] : memref<1x256xf32, #tpu.memory_space<vmem>>, vector<1x256xf32>
      %17 = vector.broadcast %16 : vector<1x256xf32> to vector<16x256xf32>
      %18 = arith.addf %15, %17 : vector<16x256xf32>
      %cst_17 = arith.constant 0.000000e+00 : f32
      %19 = vector.broadcast %cst_17 : f32 to vector<16x256xf32>
      %20 = arith.cmpf ogt, %18, %19 : vector<16x256xf32>
      %c0_18 = arith.constant 0 : index
      %c0_19 = arith.constant 0 : index
      %21 = vector.load %arg6[%c0_18, %c0_19] : memref<1x256xf32, #tpu.memory_space<vmem>>, vector<1x256xf32>
      %22 = vector.broadcast %21 : vector<1x256xf32> to vector<16x256xf32>
      %23 = arith.mulf %22, %18 : vector<16x256xf32>
      %24 = arith.select %20, %18, %23 : vector<16x256xi1>, vector<16x256xf32>
      %25 = arith.truncf %24 : vector<16x256xf32> to vector<16x256xbf16>
      %c0_20 = arith.constant 0 : index
      %c0_21 = arith.constant 0 : index
      %26 = vector.load %arg7[%c0_20, %c0_21] : memref<16x256xbf16, #tpu.memory_space<vmem>>, vector<16x256xbf16>
      tpu.vector_store %arg7[%c0_20, %c0_21], %25 {strides = array<i32>} : memref<16x256xbf16, #tpu.memory_space<vmem>>, vector<16x256xbf16>,
    } else {
    }
    return
  }
  func.func @transform_0(%arg0: i32, %arg1: i32) -> (i32, i32) {
    %c0_i32 = arith.constant 0 : i32
    return %arg0, %arg1 : i32, i32
  }
  func.func @transform_1(%arg0: i32, %arg1: i32) -> (i32, i32) {
    %c0_i32 = arith.constant 0 : i32
    %c0_i32_0 = arith.constant 0 : i32
    return %arg1, %c0_i32 : i32, i32
  }
  func.func @transform_2(%arg0: i32, %arg1: i32) -> (i32, i32) {
    %c0_i32 = arith.constant 0 : i32
    %c0_i32_0 = arith.constant 0 : i32
    %c0_i32_1 = arith.constant 0 : i32
    return %c0_i32, %c0_i32_0 : i32, i32
  }
  func.func @transform_3(%arg0: i32, %arg1: i32) -> (i32, i32) {
    %c0_i32 = arith.constant 0 : i32
    %c0_i32_0 = arith.constant 0 : i32
    %c0_i32_1 = arith.constant 0 : i32
    return %c0_i32, %c0_i32_0 : i32, i32
  }
  func.func @transform_4(%arg0: i32, %arg1: i32) -> (i32, i32) {
    %c0_i32 = arith.constant 0 : i32
    %c0_i32_0 = arith.constant 0 : i32
    %c0_i32_1 = arith.constant 0 : i32
    return %c0_i32, %c0_i32_0 : i32, i32
  }
  func.func @transform_5(%arg0: i32, %arg1: i32) -> (i32, i32) {
    %c0_i32 = arith.constant 0 : i32
    %c0_i32_0 = arith.constant 0 : i32
    return %arg0, %c0_i32 : i32, i32
  }
}

</mosaic_0001>

<bundles_post_ra>
// kernel: tpu_custom_call.1
= control target key start
LH: loop header
LB: loop body
LE: loop exit
PB: predicated region body
PF: predicated region fallthrough
CT: control target
= control target key end

     0   :  { %10 = vsyncpa [#allocation4], 0  ;;  %s618_s0 = inlined_call_operand.hbm [shape: bf16[16,16], index: 0, kind: input, shape index: {}]   ;;  %s619_s1 = inlined_call_operand.hbm [shape: bf16[16,128], index: 1, kind: input, shape index: {}]   ;;  %s620_s2 = inlined_call_operand.hbm [shape: bf16[128,256], index: 2, kind: input, shape index: {}]   ;;  %s621_s3 = inlined_call_operand.vmem [shape: f32[1,256], index: 3, kind: input, shape index: {}]   ;;  %s622_s4 = inlined_call_operand.vmem [shape: f32[1,256], index: 4, kind: input, shape index: {}]   ;;  %s623_s5 = inlined_call_operand.hbm [shape: bf16[16,256], index: 5, kind: output, shape index: {}]  }
   0x1   :  { %11 = vsyncpa [#allocation7], 0 }
   0x2   :  { %12 = vsyncpa [#allocation5], 0  ;;  %s510_s18 = smov [#allocation6]   ;;  %s511_s20 = smov [#allocation3]  }
   0x3   :  { %s30_s19 = sshll.u32 %s510_s18, 4  ;;  %s18_s21 = sshll.u32 %s511_s20, 4  ;;  %s31_s19 = int_to_ptr.vmem [resolvable:$true] %s30_s19  ;;  %s551_s21 = int_to_ptr.vmem [resolvable:$true] %s18_s21 }
   0x4   :  { %s416_s24 = scalar_lea.hbm %s619_s1, 128 }
   0x5   :  { %p417_p0 = scmp.ne.s32.totalorder %s619_s1, %s416_s24  ;;  %p420_p1 = scmp.lt.u32.totalorder %s416_s24, %s619_s1 }
   0x7   :  { %p422_p2 = pnand %p420_p1, %p417_p0 }
   0x9   :  { %425 = shalt.err (!%p422_p2)
}
   0xa   :  { %s426_s29 = scalar_lea.vmem %s31_s19, 128  ;;  %p431_p4 = scmp.lt.s32.totalorder %s31_s19, %s31_s19 }
   0xb   :  { %p427_p3 = scmp.ne.s32.totalorder %s31_s19, %s426_s29  ;;  %p432_p5 = scmp.lt.s32.totalorder %s426_s29, %s426_s29 }
   0xd   :  { %p433_p6 = por %p432_p5, %p431_p4 }
   0xf   :  { %p434_p7 = pnand %p433_p6, %p427_p3 }
  0x11   :  { %437 = shalt.err (!%p434_p7)
}
  0x12   :  { %s512_s30 = smov 64   ;;  %s513_s6 = smov 4  }
  0x13   :  { %36 = dma.hbm_to_vmem [thread:$0]  %s619_s1, 128, %s31_s19, [#allocation7], %s512_s30, %s512_s30, %s513_s6  }
  0x14   :  { %s438_s11 = scalar_lea.hbm %s618_s0, 128 }
  0x15   :  { %p439_p8 = scmp.ne.s32.totalorder %s618_s0, %s438_s11  ;;  %p442_p9 = scmp.lt.u32.totalorder %s438_s11, %s618_s0 }
  0x17   :  { %p444_p10 = pnand %p442_p9, %p439_p8 }
  0x19   :  { %447 = shalt.err (!%p444_p10)
}
  0x1a   :  { %s448_s16 = scalar_lea.vmem %s551_s21, 128  ;;  %p453_p12 = scmp.lt.s32.totalorder %s551_s21, %s551_s21 }
  0x1b   :  { %p449_p11 = scmp.ne.s32.totalorder %s551_s21, %s448_s16  ;;  %p454_p13 = scmp.lt.s32.totalorder %s448_s16, %s448_s16 }
  0x1d   :  { %p455_p0 = por %p454_p13, %p453_p12 }
  0x1f   :  { %p456_p1 = pnand %p455_p0, %p449_p11 }
  0x21   :  { %459 = shalt.err (!%p456_p1)
}
  0x22   :  { %24 = dma.hbm_to_vmem [thread:$0]  %s618_s0, 128, %s551_s21, [#allocation4], %s512_s30, %s512_s30, %s513_s6  }
  0x23   :  { %s514_s18 = smov [#allocation8]   ;;  %s460_s23 = scalar_lea.hbm %s620_s2, 2048 }
  0x24   :  { %s42_s19 = sshll.u32 %s514_s18, 4  ;;  %p461_p2 = scmp.ne.s32.totalorder %s620_s2, %s460_s23  ;;  %s43_s19 = int_to_ptr.vmem [resolvable:$true] %s42_s19 }
  0x25   :  { %p464_p3 = scmp.lt.u32.totalorder %s460_s23, %s620_s2 }
  0x27   :  { %p466_p4 = pnand %p464_p3, %p461_p2 }
  0x29   :  { %469 = shalt.err (!%p466_p4)
}
  0x2a   :  { %s470_s28 = scalar_lea.vmem %s43_s19, 2048  ;;  %p475_p6 = scmp.lt.s32.totalorder %s43_s19, %s43_s19 }
  0x2b   :  { %p471_p5 = scmp.ne.s32.totalorder %s43_s19, %s470_s28  ;;  %p476_p7 = scmp.lt.s32.totalorder %s470_s28, %s470_s28 }
  0x2d   :  { %p477_p8 = por %p476_p7, %p475_p6 }
  0x2f   :  { %p478_p9 = pnand %p477_p8, %p471_p5 }
  0x31   :  { %481 = shalt.err (!%p478_p9)
}
  0x32   :  { %s515_s0 = smov 128   ;;  %s516_s21 = smov 8  }
  0x33   :  { %48 = dma.hbm_to_vmem [thread:$0]  %s620_s2, 2048, %s43_s19, [#allocation7], %s515_s0, %s515_s0, %s516_s21  }
  0x34   :  { %504 = dma.done.wait [#allocation4], 128  }
  0x35   :  { %505 = vsyncadd [#allocation4], 4294967168 }
  0x36   :  { %506 = dma.done.wait [#allocation7], 2176  }
  0x37   :  { %507 = vsyncadd [#allocation7], 4294965120  ;;  %v517_v0 = vmov 0.0   ;;  %vm518_vm0 = vmmov 0   ;;  %v390_v1 = vld [vmem:[#allocation6] sm:$0xff]   ;;  %v391_v2 = vld [vmem:[#allocation3] sm:$0xff]   ;;  %v159_v25 = vlaneseq }
  0x38   :  { %373 = vmatprep.subr.bf16.mxu0 %v517_v0  ;;  %375 = vmatprep.mubr.msk.bf16.mxu0 %vm518_vm0, %v517_v0  ;;  %vm86_vm1 = vcmask 130048   ;;  %v392_v3 = vld [vmem:[#allocation8 + $0x4] ss:$8 sps:$4 sm:$0xff]   ;;  %v394_v4 = vld [vmem:[#allocation8] ss:$8 sps:$4 sm:$0xff]   ;;  %v519_v19 = vmov 0  }
  0x39   :  { %374 = vmatpush3.bf16.msra.mxu0 %v390_v1  ;;  %249 = vmatprep.subr.bf16.mxu1 %v392_v3  ;;  %v395_v5 = vld [vmem:[#allocation8 + $0x14] ss:$8 sps:$4 sm:$0xff]   ;;  %v397_v6 = vld [vmem:[#allocation8 + $0x10] ss:$8 sps:$4 sm:$0xff]   ;;  %v398_v7 = vld [vmem:[#allocation8 + $0x24] ss:$8 sps:$4 sm:$0xff]  }
  0x3a   :  { %250 = vmatpush1.bf16.msra.mxu1 %v394_v4  ;;  %v400_v8 = vld [vmem:[#allocation8 + $0x20] ss:$8 sps:$4 sm:$0xff]   ;;  %v401_v9 = vld [vmem:[#allocation8 + $0x34] ss:$8 sps:$4 sm:$0xff]   ;;  %v403_v10 = vld [vmem:[#allocation8 + $0x30] ss:$8 sps:$4 sm:$0xff]   ;;  %281 = vmatprep.mubr.bf16.mxu1 %v519_v19 }
  0x3b   :  { %251 = vmatprep.subr.bf16.mxu1 %v395_v5  ;;  %v404_v11 = vld [vmem:[#allocation8 + $0x44] ss:$8 sps:$4 sm:$0xff]   ;;  %v406_v12 = vld [vmem:[#allocation8 + $0x40] ss:$8 sps:$4 sm:$0xff]   ;;  %v407_v13 = vld [vmem:[#allocation8 + $0x54] ss:$8 sps:$4 sm:$0xff]  }
  0x3c   :  { %376 = vmatmul.mubr.msk.bf16.vlgmr.msra.gmra.mrb[0].mxu0 %vm86_vm1, %v391_v2  ;;  %v409_v14 = vld [vmem:[#allocation8 + $0x50] ss:$8 sps:$4 sm:$0xff]   ;;  %v410_v15 = vld [vmem:[#allocation8 + $0x64] ss:$8 sps:$4 sm:$0xff]   ;;  %v412_v16 = vld [vmem:[#allocation8 + $0x60] ss:$8 sps:$4 sm:$0xff]  }
  0x3d   :  { %v413_v17 = vld [vmem:[#allocation8 + $0x74] ss:$8 sps:$4 sm:$0xff]   ;;  %v415_v18 = vld [vmem:[#allocation8 + $0x70] ss:$8 sps:$4 sm:$0xff]   ;;  %v160_v26 = vshrl.u32 %v159_v25, 7 }
  0x3e   :  { %252 = vmatpush1.bf16.msra.mxu1 %v397_v6  ;;  %v157_v28 = vld [vmem:[%s621_s3] sm:$0x3]  ;;  %s520_s3 = smov [#allocation9]  }
  0x3f   :  { %253 = vmatprep.subr.bf16.mxu1 %v398_v7  ;;  %v161_v27 = vsub.s32 0, %v160_v26  ;;  %v165_v29 = vsub.s32 1, %v160_v26  ;;  %v296_v30 = vld [vmem:[%s622_s4] sm:$0x3]  ;;  %s335_s4 = sshll.u32 %s520_s3, 4  ;;  %s336_s4 = int_to_ptr.vmem [resolvable:$true] %s335_s4 }
  0x40   :  { %s482_s9 = scalar_lea.vmem %s336_s4, 256  ;;  %p487_p11 = scmp.lt.s32.totalorder %s336_s4, %s336_s4 }
  0x41   :  { %v162_v31 = vrot.slane %v157_v28, %v161_v27  ;;  %v166_v32 = vrot.slane %v157_v28, %v165_v29  ;;  %v301_v33 = vrot.slane %v296_v30, %v161_v27  ;;  %v305_v35 = vrot.slane %v296_v30, %v165_v29  ;;  %p483_p10 = scmp.ne.s32.totalorder %s336_s4, %s482_s9  ;;  %p488_p12 = scmp.lt.s32.totalorder %s482_s9, %s482_s9 }
  0x42   :  { %254 = vmatpush1.bf16.msra.mxu1 %v400_v8 }
  0x43   :  { %255 = vmatprep.subr.bf16.mxu1 %v401_v9  ;;  %p489_p13 = por %p488_p12, %p487_p11 }
  0x45   :  { %p490_p0 = pnand %p489_p13, %p483_p10 }
  0x46   :  { %256 = vmatpush1.bf16.msra.mxu1 %v403_v10 }
  0x47   :  { %257 = vmatprep.subr.bf16.mxu1 %v404_v11 }
  0x4a   :  { %258 = vmatpush1.bf16.msra.mxu1 %v406_v12 }
  0x4b   :  { %259 = vmatprep.subr.bf16.mxu1 %v407_v13 }
  0x4e   :  { %260 = vmatpush1.bf16.msra.mxu1 %v409_v14 }
  0x4f   :  { %261 = vmatprep.subr.bf16.mxu1 %v410_v15 }
  0x52   :  { %262 = vmatpush1.bf16.msra.mxu1 %v412_v16 }
  0x53   :  { %263 = vmatprep.subr.bf16.mxu1 %v413_v17 }
  0x56   :  { %264 = vmatpush1.bf16.msra.mxu1 %v415_v18 }
 0x10f   :  { %v124_v20 = vpop.f32.mrb[0].mxu0 }
 0x110   :  { %v377_v21 = vpop.f32.mrb[1].mxu0 }
 0x111   :  { %v127_v22 = vpop.f32.mrb[2].mxu0 }
 0x112   :  { %v140_v23 = vpack.c.bf16 %v127_v22, %v124_v20  ;;  %v378_v24 = vpop.f32.mrb[3].mxu0 }
 0x114   :  { %282 = vmatmul.mubr.bf16.vlgmr.msra.gmra.mrb[0].mxu1 %v140_v23 }
 0x1e7   :  { %v283_v34 = vpop.f32.mrb[0].mxu1 }
 0x1e8   :  { %v284_v36 = vadd.f32 %v283_v34, %v162_v31  ;;  %v285_v37 = vpop.f32.mrb[1].mxu1 }
 0x1e9   :  { %v286_v38 = vadd.f32 %v285_v37, %v166_v32  ;;  %v287_v39 = vpop.f32.mrb[2].mxu1 }
 0x1ea   :  { %vm292_vm2 = vcmp.gt.f32.partialorder %v284_v36, 0.0  ;;  %v308_v40 = vmul.f32 %v301_v33, %v284_v36  ;;  %v288_v41 = vadd.f32 %v287_v39, %v162_v31  ;;  %v289_v42 = vpop.f32.mrb[3].mxu1 }
 0x1eb   :  { %vm293_vm3 = vcmp.gt.f32.partialorder %v286_v38, 0.0  ;;  %v309_v43 = vmul.f32 %v305_v35, %v286_v38  ;;  %v290_v44 = vadd.f32 %v289_v42, %v166_v32 }
 0x1ec   :  { %v312_v45 = vsel %vm292_vm2, %v284_v36, %v308_v40  ;;  %vm294_vm4 = vcmp.gt.f32.partialorder %v288_v41, 0.0  ;;  %v310_v46 = vmul.f32 %v301_v33, %v288_v41 }
 0x1ed   :  { %v313_v47 = vsel %vm293_vm3, %v286_v38, %v309_v43  ;;  %vm295_vm5 = vcmp.gt.f32.partialorder %v290_v44, 0.0  ;;  %v311_v48 = vmul.f32 %v305_v35, %v290_v44 }
 0x1ee   :  { %v314_v49 = vsel %vm294_vm4, %v288_v41, %v310_v46  ;;  %v369_v50 = vpack.c.bf16 %v313_v47, %v312_v45 }
 0x1ef   :  { %v315_v51 = vsel %vm295_vm5, %v290_v44, %v311_v48 }
 0x1f0   :  { %v370_v52 = vpack.c.bf16 %v315_v51, %v314_v49  ;;  %328 = vst [vmem:[#allocation9] sm:$0xff] %v369_v50 }
 0x1f2   :  { %329 = vst [vmem:[#allocation9 + $0x8] sm:$0xff] %v370_v52 }
 0x1f3   :  { %493 = shalt.err (!%p490_p0)
}
 0x1f4   :  { %s494_s12 = scalar_lea.hbm %s623_s5, 256 }
 0x1f5   :  { %p495_p1 = scmp.ne.s32.totalorder %s623_s5, %s494_s12  ;;  %p498_p2 = scmp.lt.u32.totalorder %s494_s12, %s623_s5 }
 0x1f7   :  { %p500_p3 = pnand %p498_p2, %p495_p1 }
 0x1f9   :  { %503 = shalt.err (!%p500_p3)
}
 0x1fa   :  { %341 = dma.vmem_to_hbm [thread:$0]  %s336_s4, 256, %s623_s5, [#allocation5], %s515_s0, %s515_s0, %s516_s21  }
 0x1fb   :  { %508 = dma.done.wait [#allocation5], 256  }
 0x1fc   :  { %509 = vsyncadd [#allocation5], 4294967040 }
 0x1fd   :  { %345 = vsyncpa [#allocation4], 1 }
 0x1fe   :  { %346 = vsyncpa [#allocation7], 1 }
 0x1ff   :  { %347 = vsyncpa [#allocation5], 1 }

</bundles_post_ra>
